<compile_context>
chip_gen: v7x
topology: tpu7x:2x2x1
jax: 0.10.0
libtpu: 0.0.40
codegen_flags: <defaults>
</compile_context>

<pallas_src>
import jax
import jax.numpy as jnp
from jax.experimental import pallas as pl
from jax.experimental.pallas import tpu as pltpu

# TODO(synk): SkipGateBase.forward raises NotImplementedError; the identity
# gate below (out = h + x0) is a canonical placeholder for subclasses — real
# gating math (e.g. sigmoid(g)*h + (1-sigmoid(g))*x0) belongs inside
# _skip_gate_kernel so it rides the idle EUP/VPU slots of this HBM-bound loop.

_LANE = 128
_TARGET_TILE_BYTES = 4 * 1024 * 1024      # ~4 MiB per operand tile
# 3 operands x 2 pipeline buffers x 4 MiB = 24 MiB; leave headroom but stay
# well under v7x's 64 MiB physical VMEM.  Explicit so v5e's 16 MiB scoped
# default never limits the pipeline.
_VMEM_LIMIT_BYTES = 48 << 20
_WIDTH_CANDIDATES = (8192, 4096, 2048, 1024, 512, 256, 128)
_MIN_GRID_STEPS = 4                       # DMA in/out overlap + both v7x TCs


def _skip_gate_kernel(h_ref, x0_ref, o_ref):
    # Elementwise hot path: combine hidden state with skip input.
    o_ref[...] = h_ref[...] + x0_ref[...]


def _sublane_multiple(dtype):
    # f32 -> 8, bf16/f16 -> 16, int8/fp8 -> 32 (packed-sublane alignment).
    return {4: 8, 2: 16, 1: 32}.get(jnp.dtype(dtype).itemsize, 8)


def _round_up(x, m):
    return -(-x // m) * m


def _skip_gate_2d(h2, x02, *, donate_h=False):
    """Run the blocked elementwise kernel on lane-dense 2D views."""
    rows, width = h2.shape
    dtype = h2.dtype
    itemsize = jnp.dtype(dtype).itemsize
    sub = _sublane_multiple(dtype)

    # Row tile so one operand block is ~4 MiB, rounded to the dtype's sublane
    # packing, but capped so the grid has >= _MIN_GRID_STEPS steps whenever
    # the array spans more than one sublane-multiple of rows: grid=(1,) has
    # no DMA/compute overlap at all and idles one of v7x's two TensorCores.
    target_rows = max(sub, (_TARGET_TILE_BYTES // (width * itemsize)) // sub * sub)
    if rows <= sub:
        block_rows = rows                                   # full-extent block
    else:
        split_rows = _round_up(pl.cdiv(rows, _MIN_GRID_STEPS), sub)
        block_rows = max(sub, min(target_rows, split_rows))
    grid = (pl.cdiv(rows, block_rows),)
    block = (block_rows, width)

    kwargs = {}
    if donate_h:
        # Output reuses h's HBM buffer (no third full-size allocation) when
        # the caller donates h at the jit boundary.
        kwargs["input_output_aliases"] = {0: 0}

    return pl.pallas_call(
        _skip_gate_kernel,
        out_shape=jax.ShapeDtypeStruct((rows, width), dtype),
        grid=grid,
        in_specs=[
            pl.BlockSpec(block, lambda i: (i, 0)),
            pl.BlockSpec(block, lambda i: (i, 0)),
        ],
        out_specs=pl.BlockSpec(block, lambda i: (i, 0)),
        compiler_params=pltpu.CompilerParams(
            dimension_semantics=("parallel",),
            vmem_limit_bytes=_VMEM_LIMIT_BYTES,
        ),
        cost_estimate=pl.CostEstimate(
            flops=rows * width,
            transcendentals=0,
            bytes_accessed=3 * rows * width * itemsize,
        ),
        **kwargs,
    )(h2, x02)


def skip_gate_base(h, x0, *, donate_h=False):
    """Apply the (identity-gated) skip combination: out = h + x0.

    h, x0: arrays of identical shape/dtype (e.g. NCHW conv features).
    """
    assert h.shape == x0.shape and h.dtype == x0.dtype
    orig_shape = h.shape
    total = h.size

    # Prefer the widest lane-dense width that divides the flat size exactly
    # so the reshape is a free metadata op (no pad/copy HBM passes).
    width = next((w for w in _WIDTH_CANDIDATES if total % w == 0), None)
    if width is not None:
        out2 = _skip_gate_2d(h.reshape(-1, width), x0.reshape(-1, width),
                             donate_h=donate_h)
        return out2.reshape(orig_shape)

    # Awkward-size fallback: kernel on the 128-divisible prefix, plain add on
    # the (<128-element) tail — avoids full-array pad + slice round trips.
    prefix = (total // _LANE) * _LANE
    h_flat = h.reshape(-1)
    x0_flat = x0.reshape(-1)
    if prefix == 0:
        return (h_flat + x0_flat).reshape(orig_shape)
    width = next(w for w in _WIDTH_CANDIDATES if prefix % w == 0)
    out_prefix = _skip_gate_2d(
        h_flat[:prefix].reshape(-1, width),
        x0_flat[:prefix].reshape(-1, width),
        donate_h=donate_h,
    ).reshape(-1)
    out_tail = h_flat[prefix:] + x0_flat[prefix:]
    return jnp.concatenate([out_prefix, out_tail]).reshape(orig_shape)


if __name__ == "__main__":
    key = jax.random.PRNGKey(0)
    k1, k2 = jax.random.split(key)

    # Small NCHW shapes consistent with a skip-gate over conv features.
    N, C, H, W = 2, 4, 16, 16
    h = jax.random.normal(k1, (N, C, H, W), dtype=jnp.float32)
    x0 = jax.random.normal(k2, (N, C, H, W), dtype=jnp.float32)

    out = skip_gate_base(h, x0)
    out = jax.block_until_ready(out)

    # Sanity check against the plain-JAX reference of the placeholder gate.
    ref = h + x0
    assert out.shape == (N, C, H, W)
    assert out.dtype == h.dtype
    assert jnp.allclose(out, ref, atol=1e-6)

    # Also exercise an awkward (non-128-divisible) size on the prefix/tail path.
    n_odd = 1000 + 37
    ho = jax.random.normal(k1, (n_odd,), dtype=jnp.float32)
    xo = jax.random.normal(k2, (n_odd,), dtype=jnp.float32)
    out_odd = jax.block_until_ready(skip_gate_base(ho, xo))
    assert jnp.allclose(out_odd, ho + xo, atol=1e-6)

    print("KERNEL_OK")
</pallas_src>

<mosaic_0001>
module attributes {stable_mosaic.version = 11 : i64} {
  func.func @_skip_gate_kernel(%arg0: i32, %arg1: memref<1x2048xf32, #tpu.memory_space<vmem>>, %arg2: memref<1x2048xf32, #tpu.memory_space<vmem>>, %arg3: memref<1x2048xf32, #tpu.memory_space<vmem>>) attributes {dimension_semantics = [#tpu.dimension_semantics<parallel>], iteration_bounds = array<i64: 1>, scalar_prefetch = 0 : i64, scratch_operands = 0 : i64, tpu.core_type = #tpu.core_type<tc>, window_params = [{transform_indices = @transform_0, window_bounds = array<i64: 1, 2048>}, {transform_indices = @transform_1, window_bounds = array<i64: 1, 2048>}, {transform_indices = @transform_2, window_bounds = array<i64: 1, 2048>}]} {
    %c0 = arith.constant 0 : index
    %c0_0 = arith.constant 0 : index
    %0 = vector.load %arg1[%c0, %c0_0] : memref<1x2048xf32, #tpu.memory_space<vmem>>, vector<1x2048xf32>
    %c0_1 = arith.constant 0 : index
    %c0_2 = arith.constant 0 : index
    %1 = vector.load %arg2[%c0_1, %c0_2] : memref<1x2048xf32, #tpu.memory_space<vmem>>, vector<1x2048xf32>
    %2 = arith.addf %0, %1 : vector<1x2048xf32>
    %c0_3 = arith.constant 0 : index
    %c0_4 = arith.constant 0 : index
    %3 = vector.load %arg3[%c0_3, %c0_4] : memref<1x2048xf32, #tpu.memory_space<vmem>>, vector<1x2048xf32>
    tpu.vector_store %arg3[%c0_3, %c0_4], %2 {strides = array<i32>} : memref<1x2048xf32, #tpu.memory_space<vmem>>, vector<1x2048xf32>,
    return
  }
  func.func @transform_0(%arg0: i32) -> (i32, i32) {
    %c0_i32 = arith.constant 0 : i32
    %c0_i32_0 = arith.constant 0 : i32
    return %arg0, %c0_i32 : i32, i32
  }
  func.func @transform_1(%arg0: i32) -> (i32, i32) {
    %c0_i32 = arith.constant 0 : i32
    %c0_i32_0 = arith.constant 0 : i32
    return %arg0, %c0_i32 : i32, i32
  }
  func.func @transform_2(%arg0: i32) -> (i32, i32) {
    %c0_i32 = arith.constant 0 : i32
    %c0_i32_0 = arith.constant 0 : i32
    return %arg0, %c0_i32 : i32, i32
  }
}

</mosaic_0001>

<bundles_post_ra>
// kernel: tpu_custom_call.1
= control target key start
LH: loop header
LB: loop body
LE: loop exit
PB: predicated region body
PF: predicated region fallthrough
CT: control target
= control target key end

     0   :  { %7 = vsyncpa [#allocation3], 0  ;;  %s189_s0 = inlined_call_operand.hbm [shape: f32[1,2048], index: 0, kind: input, shape index: {}]   ;;  %s190_s1 = inlined_call_operand.hbm [shape: f32[1,2048], index: 1, kind: input, shape index: {}]   ;;  %s191_s2 = inlined_call_operand.hbm [shape: f32[1,2048], index: 2, kind: output, shape index: {}]  }
   0x1   :  { %8 = vsyncpa [#allocation6], 0 }
   0x2   :  { %9 = vsyncpa [#allocation4], 0  ;;  %s135_s9 = smov [#allocation2]   ;;  %s136_s11 = smov [#allocation5]  }
   0x3   :  { %s16_s10 = sshll.u32 %s135_s9, 4  ;;  %s26_s12 = sshll.u32 %s136_s11, 4  ;;  %s17_s10 = int_to_ptr.vmem [resolvable:$true] %s16_s10  ;;  %s27_s12 = int_to_ptr.vmem [resolvable:$true] %s26_s12 }
   0x4   :  { %s63_s15 = scalar_lea.hbm %s189_s0, 256 }
   0x5   :  { %p64_p0 = scmp.ne.s32.totalorder %s189_s0, %s63_s15  ;;  %p67_p1 = scmp.lt.u32.totalorder %s63_s15, %s189_s0 }
   0x7   :  { %p69_p2 = pnand %p67_p1, %p64_p0 }
   0x9   :  { %72 = shalt.err (!%p69_p2)
}
   0xa   :  { %s73_s20 = scalar_lea.vmem %s17_s10, 256  ;;  %p78_p4 = scmp.lt.s32.totalorder %s17_s10, %s17_s10 }
   0xb   :  { %p74_p3 = scmp.ne.s32.totalorder %s17_s10, %s73_s20  ;;  %p79_p5 = scmp.lt.s32.totalorder %s73_s20, %s73_s20 }
   0xd   :  { %p80_p6 = por %p79_p5, %p78_p4 }
   0xf   :  { %p81_p7 = pnand %p80_p6, %p74_p3 }
  0x11   :  { %84 = shalt.err (!%p81_p7)
}
  0x12   :  { %19 = dma.hbm_to_vmem [thread:$0]  %s189_s0, 256, %s17_s10, [#allocation3]  }
  0x13   :  { %s85_s25 = scalar_lea.hbm %s190_s1, 256 }
  0x14   :  { %p86_p8 = scmp.ne.s32.totalorder %s190_s1, %s85_s25  ;;  %p89_p9 = scmp.lt.u32.totalorder %s85_s25, %s190_s1 }
  0x16   :  { %p91_p10 = pnand %p89_p9, %p86_p8 }
  0x18   :  { %94 = shalt.err (!%p91_p10)
}
  0x19   :  { %s95_s30 = scalar_lea.vmem %s27_s12, 256  ;;  %p100_p12 = scmp.lt.s32.totalorder %s27_s12, %s27_s12 }
  0x1a   :  { %p96_p11 = scmp.ne.s32.totalorder %s27_s12, %s95_s30  ;;  %p101_p13 = scmp.lt.s32.totalorder %s95_s30, %s95_s30 }
  0x1c   :  { %p102_p0 = por %p101_p13, %p100_p12 }
  0x1e   :  { %p103_p1 = pnand %p102_p0, %p96_p11 }
  0x20   :  { %106 = shalt.err (!%p103_p1)
}
  0x21   :  { %29 = dma.hbm_to_vmem [thread:$0]  %s190_s1, 256, %s27_s12, [#allocation6]  }
  0x22   :  { %129 = dma.done.wait [#allocation3], 256  }
  0x23   :  { %130 = vsyncadd [#allocation3], 4294967040 }
  0x24   :  { %131 = dma.done.wait [#allocation6], 256  }
  0x25   :  { %132 = vsyncadd [#allocation6], 4294967040  ;;  %s137_s4 = smov [#allocation7]   ;;  %v36_v0 = vld [vmem:[#allocation2] sm:$0xff]  ;;  %v38_v1 = vld [vmem:[#allocation5] sm:$0xff] }
  0x26   :  { %s50_s5 = sshll.u32 %s137_s4, 4  ;;  %v37_v2 = vld [vmem:[#allocation2 + $0x8] sm:$0xff]  ;;  %v40_v3 = vadd.f32 %v38_v1, %v36_v0  ;;  %v39_v4 = vld [vmem:[#allocation5 + $0x8] sm:$0xff]  ;;  %s51_s5 = int_to_ptr.vmem [resolvable:$true] %s50_s5 }
  0x27   :  { %v41_v5 = vadd.f32 %v39_v4, %v37_v2  ;;  %s107_s6 = scalar_lea.vmem %s51_s5, 256  ;;  %p112_p3 = scmp.lt.s32.totalorder %s51_s5, %s51_s5 }
  0x28   :  { %42 = vst [vmem:[#allocation7] sm:$0xff] %v40_v3  ;;  %p108_p2 = scmp.ne.s32.totalorder %s51_s5, %s107_s6  ;;  %p113_p4 = scmp.lt.s32.totalorder %s107_s6, %s107_s6 }
  0x29   :  { %43 = vst [vmem:[#allocation7 + $0x8] sm:$0xff] %v41_v5 }
  0x2a   :  { %p114_p5 = por %p113_p4, %p112_p3 }
  0x2c   :  { %p115_p6 = pnand %p114_p5, %p108_p2 }
  0x2e   :  { %118 = shalt.err (!%p115_p6)
}
  0x2f   :  { %s119_s8 = scalar_lea.hbm %s191_s2, 256 }
  0x30   :  { %p120_p7 = scmp.ne.s32.totalorder %s191_s2, %s119_s8  ;;  %p123_p8 = scmp.lt.u32.totalorder %s119_s8, %s191_s2 }
  0x32   :  { %p125_p9 = pnand %p123_p8, %p120_p7 }
  0x34   :  { %128 = shalt.err (!%p125_p9)
}
  0x35   :  { %53 = dma.vmem_to_hbm [thread:$0]  %s51_s5, 256, %s191_s2, [#allocation4]  }
  0x36   :  { %133 = dma.done.wait [#allocation4], 256  }
  0x37   :  { %134 = vsyncadd [#allocation4], 4294967040 }
  0x38   :  { %57 = vsyncpa [#allocation3], 1 }
  0x39   :  { %58 = vsyncpa [#allocation6], 1 }
  0x3a   :  { %59 = vsyncpa [#allocation4], 1 }

</bundles_post_ra>
